<compile_context>
chip_gen: v6e
topology: v6e:2x2x1
jax: 0.10.0
libtpu: 0.0.40
codegen_flags: <defaults>
</compile_context>

<pallas_src>
import jax
import jax.numpy as jnp
from jax.experimental import pallas as pl
from jax.experimental.pallas import tpu as pltpu

_LANE = 512            # lane-dense last dim (multiple of 128)
_MAX_BLOCK_ROWS = 512  # 512 x 512 f32 = 1 MiB per block (x2 dbl-buffer, x2 in/out)


def _silu_kernel(x_ref, o_ref):
    x = x_ref[...].astype(jnp.float32)
    o_ref[...] = (x * (1.0 / (1.0 + jnp.exp(-x)))).astype(o_ref.dtype)


def _round_up(a, b):
    return -(-a // b) * b


def glu(x):
    """Element-wise x * sigmoid(x) via a tiled, lane-dense Pallas kernel."""
    orig_shape = x.shape
    dtype = x.dtype
    flat = x.reshape(-1)
    n = flat.shape[0]

    rows = -(-n // _LANE)                                   # cdiv
    block_rows = min(_MAX_BLOCK_ROWS, _round_up(max(rows, 1), 8))
    rows_p = _round_up(max(rows, 1), block_rows)
    n_p = rows_p * _LANE

    # Zero padding is inert for SiLU: 0 * sigmoid(0) == 0.
    flat = jnp.pad(flat, (0, n_p - n))
    x2 = flat.reshape(rows_p, _LANE)

    out = pl.pallas_call(
        _silu_kernel,
        out_shape=jax.ShapeDtypeStruct((rows_p, _LANE), dtype),
        grid_spec=pltpu.PrefetchScalarGridSpec(
            num_scalar_prefetch=0,
            grid=(rows_p // block_rows,),
            in_specs=[pl.BlockSpec((block_rows, _LANE), lambda i: (i, 0))],
            out_specs=pl.BlockSpec((block_rows, _LANE), lambda i: (i, 0)),
        ),
        compiler_params=pltpu.CompilerParams(
            dimension_semantics=("parallel",)),
    )(x2)

    return out.reshape(-1)[:n].reshape(orig_shape)


if __name__ == "__main__":
    key = jax.random.PRNGKey(0)
    x = jax.random.normal(key, (2, 4, 16, 16), jnp.float32)

    out = jax.block_until_ready(glu(x))

    ref = x * jax.nn.sigmoid(x)
    assert out.shape == x.shape, out.shape
    assert bool(jnp.all(jnp.isfinite(out)))
    assert bool(jnp.allclose(out, ref, atol=1e-6, rtol=1e-6))
    print("KERNEL_OK")
</pallas_src>

<mosaic_0001>
module attributes {stable_mosaic.version = 11 : i64} {
  func.func @_silu_kernel(%arg0: i32, %arg1: memref<8x512xf32, #tpu.memory_space<vmem>>, %arg2: memref<8x512xf32, #tpu.memory_space<vmem>>) attributes {dimension_semantics = [#tpu.dimension_semantics<parallel>], iteration_bounds = array<i64: 1>, scalar_prefetch = 0 : i64, scratch_operands = 0 : i64, tpu.core_type = #tpu.core_type<tc>, window_params = [{transform_indices = @transform_0, window_bounds = array<i64: 8, 512>}, {transform_indices = @transform_1, window_bounds = array<i64: 8, 512>}]} {
    %c0 = arith.constant 0 : index
    %c0_0 = arith.constant 0 : index
    %0 = vector.load %arg1[%c0, %c0_0] : memref<8x512xf32, #tpu.memory_space<vmem>>, vector<8x512xf32>
    %cst = arith.constant 0.000000e+00 : f32
    %1 = vector.broadcast %cst : f32 to vector<8x512xf32>
    %2 = arith.subf %1, %0 : vector<8x512xf32>
    %3 = math.exp %2 : vector<8x512xf32>
    %cst_1 = arith.constant 1.000000e+00 : f32
    %4 = vector.broadcast %cst_1 : f32 to vector<8x512xf32>
    %5 = arith.addf %4, %3 : vector<8x512xf32>
    %cst_2 = arith.constant 1.000000e+00 : f32
    %6 = vector.broadcast %cst_2 : f32 to vector<8x512xf32>
    %7 = arith.divf %6, %5 : vector<8x512xf32>
    %8 = arith.mulf %0, %7 : vector<8x512xf32>
    %c0_3 = arith.constant 0 : index
    %c0_4 = arith.constant 0 : index
    %9 = vector.load %arg2[%c0_3, %c0_4] : memref<8x512xf32, #tpu.memory_space<vmem>>, vector<8x512xf32>
    tpu.vector_store %arg2[%c0_3, %c0_4], %8 {strides = array<i32>} : memref<8x512xf32, #tpu.memory_space<vmem>>, vector<8x512xf32>,
    return
  }
  func.func @transform_0(%arg0: i32) -> (i32, i32) {
    %c0_i32 = arith.constant 0 : i32
    %c0_i32_0 = arith.constant 0 : i32
    return %arg0, %c0_i32 : i32, i32
  }
  func.func @transform_1(%arg0: i32) -> (i32, i32) {
    %c0_i32 = arith.constant 0 : i32
    %c0_i32_0 = arith.constant 0 : i32
    return %arg0, %c0_i32 : i32, i32
  }
}

</mosaic_0001>

<bundles_post_ra>
// kernel: tpu_custom_call.1
= control target key start
LH: loop header
LB: loop body
LE: loop exit
PB: predicated region body
PF: predicated region fallthrough
CT: control target
= control target key end

     0   :  { %6 = vsyncpa [#allocation3], 0  ;;  %s152_s0 = inlined_call_operand.hbm [shape: f32[8,512], index: 0, kind: input, shape index: {}]   ;;  %s153_s1 = inlined_call_operand.hbm [shape: f32[8,512], index: 1, kind: output, shape index: {}]  }
   0x1   :  { %7 = vsyncpa [#allocation4], 0  ;;  %s134_s6 = smov [#allocation2]  }
   0x2   :  { %s14_s7 = sshll.u32 %s134_s6, 4  ;;  %s15_s7 = int_to_ptr.vmem [resolvable:$true] %s14_s7 }
   0x3   :  { %s98_s8 = scalar_lea.vmem %s15_s7, 512  ;;  %p103_p1 = scmp.lt.s32.totalorder %s15_s7, %s15_s7 }
   0x4   :  { %p99_p0 = scmp.ne.s32.totalorder %s15_s7, %s98_s8  ;;  %p104_p2 = scmp.lt.s32.totalorder %s98_s8, %s98_s8 }
   0x6   :  { %p105_p3 = por %p104_p2, %p103_p1 }
   0x8   :  { %p106_p4 = pnand %p105_p3, %p99_p0 }
   0xa   :  { %109 = shalt.err (!%p106_p4)
}
   0xb   :  { %17 = dma.hbm_to_vmem [thread:$0]  %s152_s0, 512, %s15_s7, [#allocation3]  }
   0xc   :  { %130 = dma.done.wait [#allocation3], 512  }
   0xd   :  { %131 = vsyncadd [#allocation3], 4294966784  ;;  %v21_v0 = vld [vmem:[#allocation2] sm:$0xff]  ;;  %v22_v1 = vld [vmem:[#allocation2 + $0x8] sm:$0xff]  ;;  %s135_s0 = smov [#allocation5]  }
   0xe   :  { %v23_v2 = vld [vmem:[#allocation2 + $0x10] sm:$0xff]  ;;  %v25_v3 = vsub.f32 0.0, %v21_v0  ;;  %v26_v4 = vsub.f32 0.0, %v22_v1  ;;  %v24_v6 = vld [vmem:[#allocation2 + $0x18] sm:$0xff]  ;;  %s63_s11 = sshll.u32 %s135_s0, 4  ;;  %s64_s11 = int_to_ptr.vmem [resolvable:$true] %s63_s11 }
   0xf   :  { %v27_v5 = vsub.f32 0.0, %v23_v2  ;;  %v28_v7 = vsub.f32 0.0, %v24_v6  ;;  %s110_s12 = scalar_lea.vmem %s64_s11, 512  ;;  %p115_p6 = scmp.lt.s32.totalorder %s64_s11, %s64_s11 }
  0x10   :  { %v29_v8 = vmul.f32 1.442695, %v25_v3  ;;  %v31_v9 = vmul.f32 1.442695, %v26_v4  ;;  %p111_p5 = scmp.ne.s32.totalorder %s64_s11, %s110_s12  ;;  %p116_p7 = scmp.lt.s32.totalorder %s110_s12, %s110_s12 }
  0x11   :  { %v33_v10 = vmul.f32 1.442695, %v27_v5  ;;  %v35_v11 = vmul.f32 1.442695, %v28_v7 }
  0x12   :  { %74 = vpow2.f32 %v29_v8  ;;  %p117_p8 = por %p116_p7, %p115_p6 }
  0x13   :  { %76 = vpow2.f32 %v31_v9 }
  0x14   :  { %78 = vpow2.f32 %v33_v10  ;;  %p118_p9 = pnand %p117_p8, %p111_p5 }
  0x15   :  { %80 = vpow2.f32 %v35_v11 }
  0x1f   :  { %v75_v12 = vpop.eup %74 }
  0x20   :  { %v77_v13 = vpop.eup %76  ;;  %v37_v14 = vadd.f32 1.0, %v75_v12 }
  0x21   :  { %v79_v15 = vpop.eup %78  ;;  %v38_v16 = vadd.f32 1.0, %v77_v13 }
  0x22   :  { %v81_v17 = vpop.eup %80  ;;  %82 = vrcp.f32 %v37_v14  ;;  %v39_v18 = vadd.f32 1.0, %v79_v15 }
  0x23   :  { %84 = vrcp.f32 %v38_v16  ;;  %v40_v19 = vadd.f32 1.0, %v81_v17 }
  0x24   :  { %86 = vrcp.f32 %v39_v18 }
  0x25   :  { %88 = vrcp.f32 %v40_v19 }
  0x2f   :  { %v83_v20 = vpop.eup %82 }
  0x30   :  { %v85_v21 = vpop.eup %84  ;;  %v49_v22 = vmul.f32 %v83_v20, %v21_v0 }
  0x31   :  { %v87_v23 = vpop.eup %86  ;;  %v50_v24 = vmul.f32 %v85_v21, %v22_v1 }
  0x32   :  { %v89_v25 = vpop.eup %88  ;;  %53 = vst [vmem:[#allocation5] sm:$0xff] %v49_v22  ;;  %v51_v26 = vmul.f32 %v87_v23, %v23_v2 }
  0x33   :  { %54 = vst [vmem:[#allocation5 + $0x8] sm:$0xff] %v50_v24  ;;  %v52_v27 = vmul.f32 %v89_v25, %v24_v6 }
  0x34   :  { %55 = vst [vmem:[#allocation5 + $0x10] sm:$0xff] %v51_v26 }
  0x35   :  { %56 = vst [vmem:[#allocation5 + $0x18] sm:$0xff] %v52_v27 }
  0x36   :  { %121 = shalt.err (!%p118_p9)
}
  0x37   :  { %66 = dma.vmem_to_hbm [thread:$0]  %s64_s11, 512, %s153_s1, [#allocation4]  }
  0x38   :  { %132 = dma.done.wait [#allocation4], 512  }
  0x39   :  { %133 = vsyncadd [#allocation4], 4294966784 }
  0x3a   :  { %70 = vsyncpa [#allocation3], 1 }
  0x3b   :  { %71 = vsyncpa [#allocation4], 1 }

</bundles_post_ra>
